<compile_context>
chip_gen: v7x
topology: tpu7x:2x2x1
jax: 0.10.0
libtpu: 0.0.40
codegen_flags: <defaults>
</compile_context>

<pallas_src>
import functools

import jax
import jax.numpy as jnp
from jax.experimental import pallas as pl
from jax.experimental.pallas import tpu as pltpu


def _round_up(x, m):
    return (x + m - 1) // m * m


def _round_down(x, m):
    return x // m * m


def _vmem_capacity_bytes():
    """Per-core VMEM capacity; conservative 64 MiB fallback if the query fails."""
    try:
        cap = int(pltpu.get_tpu_info().vmem_capacity_bytes)
        if cap >= 16 * 1024 * 1024:
            return cap, True
    except Exception:
        pass
    return 64 * 1024 * 1024, False


# ---------------------------------------------------------------------------
# Kernel
# ---------------------------------------------------------------------------
def fcblock_kernel(x_ref, w_ref, b_ref, gamma_ref, beta_ref, o_ref, *,
                   f_out_true, inv_f_out, needs_out_mask, eps, single_k):
    # grid = (batch_tiles, k_tiles); K (reduction) axis is last / "arbitrary".
    k = pl.program_id(1)

    # Linear partial sum for this K tile: bf16 (or f32) operands, f32 MXU acc.
    partial = jnp.dot(x_ref[...], w_ref[...], preferred_element_type=jnp.float32)

    if single_k:
        o_ref[...] = partial
    else:
        # Accumulate directly into the resident f32 output tile (its block
        # index is constant across k), no separate scratch needed.
        @pl.when(k == 0)
        def _():
            o_ref[...] = partial

        @pl.when(k > 0)
        def _():
            o_ref[...] += partial

    def _epilogue():
        y = o_ref[...] + b_ref[...]
        # LayerNorm over the true out_features. Padded output columns of y are
        # exactly zero (zero-padded W and b), so the row sum is unaffected; the
        # centered term is masked so the variance is exact as well.
        mean = jnp.sum(y, axis=-1, keepdims=True) * inv_f_out
        centered = y - mean
        if needs_out_mask:
            col = jax.lax.broadcasted_iota(jnp.int32, y.shape, 1)
            centered = jnp.where(col < f_out_true, centered, 0.0)
        var = jnp.sum(centered * centered, axis=-1, keepdims=True) * inv_f_out
        y_hat = centered * jax.lax.rsqrt(var + eps)
        out = y_hat * gamma_ref[...] + beta_ref[...]
        # ReLU (Dropout is identity in eval mode).
        o_ref[...] = jnp.maximum(out, 0.0).astype(o_ref.dtype)

    if single_k:
        _epilogue()
    else:
        pl.when(k == pl.num_programs(1) - 1)(_epilogue)


# ---------------------------------------------------------------------------
# One-time parameter preparation (padding / casting hoisted off the hot path)
# ---------------------------------------------------------------------------
def fcblock_prepare(w, b, gamma, beta, *, mxu_dtype=jnp.bfloat16):
    """Pad/cast parameters once; decide the K tiling from the VMEM budget."""
    F_in, F_out = w.shape
    itm = jnp.dtype(mxu_dtype).itemsize
    F_out_pad = _round_up(F_out, 128)            # lane-dense output stores
    F_in_128 = _round_up(F_in, 128)

    vmem_cap, have_info = _vmem_capacity_bytes()
    budget = int(0.75 * vmem_cap)                # headroom for compiler scratch

    if F_in_128 * F_out_pad * itm <= budget // 3:
        # W fully VMEM-resident: single K step, no re-streaming per batch tile.
        tk, n_k, F_in_pad = F_in_128, 1, F_in_128
    else:
        # K-tiled: tk is a multiple of 128, bounded by ~1/3 of the budget
        # (double-buffered), chosen to minimize F_in padding waste.
        tk_cap = max(128, _round_down(budget // (6 * F_out_pad * itm), 128))
        best_key, best_tk = None, 128
        for cand in range(128, tk_cap + 1, 128):
            key = (_round_up(F_in_128, cand) - F_in_128, -cand)
            if best_key is None or key < best_key:
                best_key, best_tk = key, cand
        tk = best_tk
        F_in_pad = _round_up(F_in_128, tk)
        n_k = F_in_pad // tk

    if (F_in_pad, F_out_pad) != (F_in, F_out):
        wp = jnp.pad(w, ((0, F_in_pad - F_in), (0, F_out_pad - F_out)))
    else:
        wp = w
    wp = wp.astype(mxu_dtype)

    def _row(v):
        if F_out_pad != F_out:
            v = jnp.pad(v, (0, F_out_pad - F_out))
        return v.reshape(1, F_out_pad).astype(jnp.float32)

    return dict(
        w=wp, b=_row(b), gamma=_row(gamma), beta=_row(beta),
        F_in=F_in, F_out=F_out, F_in_pad=F_in_pad, F_out_pad=F_out_pad,
        tk=tk, n_k=n_k, mxu_dtype=mxu_dtype, itemsize=itm,
        vmem_cap=vmem_cap, budget=budget,
        likely_two_tc=(have_info and vmem_cap <= 64 * 1024 * 1024),
    )


# ---------------------------------------------------------------------------
# Forward
# ---------------------------------------------------------------------------
def fcblock_forward(x, params, *, eps=1e-4):
    """x: (B, F_in). params: from fcblock_prepare(). Returns (B, F_out) f32."""
    B, F_in = x.shape
    assert F_in == params["F_in"], "x feature dim mismatch with prepared params"
    F_out, F_out_pad = params["F_out"], params["F_out_pad"]
    F_in_pad, tk, n_k = params["F_in_pad"], params["tk"], params["n_k"]
    itm, budget = params["itemsize"], params["budget"]

    # ---- adaptive batch tile: fit all resident buffers in the VMEM budget ----
    fixed = 2 * tk * F_out_pad * itm + 6 * F_out_pad * 4   # W (x2 bufs) + b/gamma/beta
    per_row = 2 * tk * itm + 2 * F_out_pad * 4             # x + f32 output, double-buffered
    tb_cap = min(1024, _round_up(B, 8),
                 max(8, _round_down((budget - fixed) // per_row, 8)))

    n_b = pl.cdiv(B, tb_cap)
    if params["likely_two_tc"] and B >= 16:
        n_b = max(n_b, 2)                # shard the parallel batch axis on 2-TC chips
    tb = _round_up(pl.cdiv(B, n_b), 8)   # balanced tiles, minimal batch padding
    if tb > 128:                         # MXU-friendly alignment when it is free
        aligned = _round_up(tb, 256 if tb >= 256 else 128)
        if aligned <= tb_cap:
            tb = aligned
    B_pad = _round_up(B, tb)
    n_b = B_pad // tb

    # ---- pad/cast x only when needed (params were padded once in prepare) ----
    xp = x
    if (B_pad, F_in_pad) != (B, F_in):
        xp = jnp.pad(x, ((0, B_pad - B), (0, F_in_pad - F_in)))
    if xp.dtype != params["mxu_dtype"]:
        xp = xp.astype(params["mxu_dtype"])

    kernel = functools.partial(
        fcblock_kernel,
        f_out_true=F_out,
        inv_f_out=float(1.0 / F_out),
        needs_out_mask=(F_out_pad != F_out),
        eps=float(eps),
        single_k=(n_k == 1),
    )

    vmem_limit = int(0.85 * params["vmem_cap"])

    out = pl.pallas_call(
        kernel,
        out_shape=jax.ShapeDtypeStruct((B_pad, F_out_pad), jnp.float32),
        grid_spec=pltpu.PrefetchScalarGridSpec(
            num_scalar_prefetch=0,
            grid=(n_b, n_k),
            in_specs=[
                pl.BlockSpec((tb, tk), lambda i, k: (i, k)),          # x tile
                pl.BlockSpec((tk, F_out_pad), lambda i, k: (k, 0)),   # W tile
                pl.BlockSpec((1, F_out_pad), lambda i, k: (0, 0)),    # bias
                pl.BlockSpec((1, F_out_pad), lambda i, k: (0, 0)),    # gamma
                pl.BlockSpec((1, F_out_pad), lambda i, k: (0, 0)),    # beta
            ],
            out_specs=pl.BlockSpec((tb, F_out_pad), lambda i, k: (i, 0)),
        ),
        compiler_params=pltpu.CompilerParams(
            dimension_semantics=("parallel", "arbitrary"),
            vmem_limit_bytes=vmem_limit,
        ),
    )(xp, params["w"], params["b"], params["gamma"], params["beta"])

    return out[:B, :F_out]


# ---------------------------------------------------------------------------
# Pure-JAX reference
# ---------------------------------------------------------------------------
def fcblock_reference(x, w, b, gamma, beta, eps=1e-4):
    y = x @ w + b
    mean = jnp.mean(y, axis=-1, keepdims=True)
    var = jnp.mean((y - mean) ** 2, axis=-1, keepdims=True)
    y_hat = (y - mean) / jnp.sqrt(var + eps)
    return jnp.maximum(y_hat * gamma + beta, 0.0)


if __name__ == "__main__":
    # Small shapes consistent with the module: batch=8, in_features=32, out=128.
    B, F_in, F_out = 8, 32, 128

    key = jax.random.PRNGKey(0)
    kx, kw, kb = jax.random.split(key, 3)

    x = jax.random.normal(kx, (B, F_in), dtype=jnp.float32)

    # Deterministic parameter init (mimics nn.Linear's uniform(+/- 1/sqrt(fan_in)))
    bound = 1.0 / jnp.sqrt(jnp.float32(F_in))
    w = jax.random.uniform(kw, (F_in, F_out), dtype=jnp.float32,
                           minval=-bound, maxval=bound)
    b = jax.random.uniform(kb, (F_out,), dtype=jnp.float32,
                           minval=-bound, maxval=bound)
    # nn.LayerNorm defaults: weight=1, bias=0
    gamma = jnp.ones((F_out,), dtype=jnp.float32)
    beta = jnp.zeros((F_out,), dtype=jnp.float32)

    ref = fcblock_reference(x, w, b, gamma, beta)

    # f32 MXU operands: tight check against the reference.
    params_f32 = fcblock_prepare(w, b, gamma, beta, mxu_dtype=jnp.float32)
    out_f32 = jax.block_until_ready(fcblock_forward(x, params_f32))
    assert out_f32.shape == (B, F_out)
    assert jnp.allclose(out_f32, ref, atol=1e-4, rtol=1e-4), "f32 mismatch vs reference"

    # Default bf16 MXU operands (f32 accumulation): looser tolerance.
    params_bf16 = fcblock_prepare(w, b, gamma, beta)
    out_bf16 = jax.block_until_ready(fcblock_forward(x, params_bf16))
    assert out_bf16.shape == (B, F_out)
    assert jnp.allclose(out_bf16, ref, atol=3e-2, rtol=3e-2), "bf16 mismatch vs reference"

    print("KERNEL_OK")
</pallas_src>

<mosaic_0001>
module attributes {stable_mosaic.version = 11 : i64} {
  func.func @fcblock_kernel(%arg0: i32, %arg1: i32, %arg2: memref<8x128xf32, #tpu.memory_space<vmem>>, %arg3: memref<128x128xf32, #tpu.memory_space<vmem>>, %arg4: memref<1x128xf32, #tpu.memory_space<vmem>>, %arg5: memref<1x128xf32, #tpu.memory_space<vmem>>, %arg6: memref<1x128xf32, #tpu.memory_space<vmem>>, %arg7: memref<8x128xf32, #tpu.memory_space<vmem>>) attributes {dimension_semantics = [#tpu.dimension_semantics<parallel>, #tpu.dimension_semantics<arbitrary>], iteration_bounds = array<i64: 1, 1>, scalar_prefetch = 0 : i64, scratch_operands = 0 : i64, tpu.core_type = #tpu.core_type<tc>, window_params = [{transform_indices = @transform_0, window_bounds = array<i64: 8, 128>}, {transform_indices = @transform_1, window_bounds = array<i64: 128, 128>}, {pipeline_mode = #tpu.pipeline_mode<synchronous>, transform_indices = @transform_2, window_bounds = array<i64: 1, 128>}, {pipeline_mode = #tpu.pipeline_mode<synchronous>, transform_indices = @transform_3, window_bounds = array<i64: 1, 128>}, {pipeline_mode = #tpu.pipeline_mode<synchronous>, transform_indices = @transform_4, window_bounds = array<i64: 1, 128>}, {transform_indices = @transform_5, window_bounds = array<i64: 8, 128>}]} {
    %c0 = arith.constant 0 : index
    %c0_0 = arith.constant 0 : index
    %0 = vector.load %arg2[%c0, %c0_0] : memref<8x128xf32, #tpu.memory_space<vmem>>, vector<8x128xf32>
    %c0_1 = arith.constant 0 : index
    %c0_2 = arith.constant 0 : index
    %1 = vector.load %arg3[%c0_1, %c0_2] : memref<128x128xf32, #tpu.memory_space<vmem>>, vector<128x128xf32>
    %cst = arith.constant dense<0.000000e+00> : vector<8x128xf32>
    %2 = tpu.matmul %0, %1, %cst {dimension_numbers = #tpu.dot_dimension_numbers<[1], [0], [0], [1], [0, 0, 1, 1], [], []>} : vector<8x128xf32>, vector<128x128xf32>, vector<8x128xf32> -> vector<8x128xf32>
    %c0_3 = arith.constant 0 : index
    %c0_4 = arith.constant 0 : index
    %3 = vector.load %arg7[%c0_3, %c0_4] : memref<8x128xf32, #tpu.memory_space<vmem>>, vector<8x128xf32>
    tpu.vector_store %arg7[%c0_3, %c0_4], %2 {strides = array<i32>} : memref<8x128xf32, #tpu.memory_space<vmem>>, vector<8x128xf32>,
    %c0_5 = arith.constant 0 : index
    %c0_6 = arith.constant 0 : index
    %4 = vector.load %arg7[%c0_5, %c0_6] : memref<8x128xf32, #tpu.memory_space<vmem>>, vector<8x128xf32>
    %c0_7 = arith.constant 0 : index
    %c0_8 = arith.constant 0 : index
    %5 = vector.load %arg4[%c0_7, %c0_8] : memref<1x128xf32, #tpu.memory_space<vmem>>, vector<1x128xf32>
    %6 = vector.broadcast %5 : vector<1x128xf32> to vector<8x128xf32>
    %7 = arith.addf %4, %6 : vector<8x128xf32>
    %cst_9 = arith.constant dense<0.000000e+00> : vector<8xf32>
    %8 = vector.multi_reduction <add>, %7, %cst_9 [1] : vector<8x128xf32> to vector<8xf32>
    %9 = vector.shape_cast %8 : vector<8xf32> to vector<8x1xf32>
    %cst_10 = arith.constant 7.812500e-03 : f32
    %10 = vector.broadcast %cst_10 : f32 to vector<8x1xf32>
    %11 = arith.mulf %9, %10 : vector<8x1xf32>
    %12 = vector.broadcast %11 : vector<8x1xf32> to vector<8x128xf32>
    %13 = arith.subf %7, %12 : vector<8x128xf32>
    %14 = arith.mulf %13, %13 : vector<8x128xf32>
    %cst_11 = arith.constant dense<0.000000e+00> : vector<8xf32>
    %15 = vector.multi_reduction <add>, %14, %cst_11 [1] : vector<8x128xf32> to vector<8xf32>
    %16 = vector.shape_cast %15 : vector<8xf32> to vector<8x1xf32>
    %cst_12 = arith.constant 7.812500e-03 : f32
    %17 = vector.broadcast %cst_12 : f32 to vector<8x1xf32>
    %18 = arith.mulf %16, %17 : vector<8x1xf32>
    %cst_13 = arith.constant 9.99999974E-5 : f32
    %19 = vector.broadcast %cst_13 : f32 to vector<8x1xf32>
    %20 = arith.addf %18, %19 : vector<8x1xf32>
    %21 = math.rsqrt %20 : vector<8x1xf32>
    %22 = vector.broadcast %21 : vector<8x1xf32> to vector<8x128xf32>
    %23 = arith.mulf %13, %22 : vector<8x128xf32>
    %c0_14 = arith.constant 0 : index
    %c0_15 = arith.constant 0 : index
    %24 = vector.load %arg5[%c0_14, %c0_15] : memref<1x128xf32, #tpu.memory_space<vmem>>, vector<1x128xf32>
    %25 = vector.broadcast %24 : vector<1x128xf32> to vector<8x128xf32>
    %26 = arith.mulf %23, %25 : vector<8x128xf32>
    %c0_16 = arith.constant 0 : index
    %c0_17 = arith.constant 0 : index
    %27 = vector.load %arg6[%c0_16, %c0_17] : memref<1x128xf32, #tpu.memory_space<vmem>>, vector<1x128xf32>
    %28 = vector.broadcast %27 : vector<1x128xf32> to vector<8x128xf32>
    %29 = arith.addf %26, %28 : vector<8x128xf32>
    %cst_18 = arith.constant 0.000000e+00 : f32
    %30 = vector.broadcast %cst_18 : f32 to vector<8x128xf32>
    %31 = arith.maximumf %29, %30 : vector<8x128xf32>
    %c0_19 = arith.constant 0 : index
    %c0_20 = arith.constant 0 : index
    %32 = vector.load %arg7[%c0_19, %c0_20] : memref<8x128xf32, #tpu.memory_space<vmem>>, vector<8x128xf32>
    tpu.vector_store %arg7[%c0_19, %c0_20], %31 {strides = array<i32>} : memref<8x128xf32, #tpu.memory_space<vmem>>, vector<8x128xf32>,
    return
  }
  func.func @transform_0(%arg0: i32, %arg1: i32) -> (i32, i32) {
    %c0_i32 = arith.constant 0 : i32
    return %arg0, %arg1 : i32, i32
  }
  func.func @transform_1(%arg0: i32, %arg1: i32) -> (i32, i32) {
    %c0_i32 = arith.constant 0 : i32
    %c0_i32_0 = arith.constant 0 : i32
    return %arg1, %c0_i32 : i32, i32
  }
  func.func @transform_2(%arg0: i32, %arg1: i32) -> (i32, i32) {
    %c0_i32 = arith.constant 0 : i32
    %c0_i32_0 = arith.constant 0 : i32
    %c0_i32_1 = arith.constant 0 : i32
    return %c0_i32, %c0_i32_0 : i32, i32
  }
  func.func @transform_3(%arg0: i32, %arg1: i32) -> (i32, i32) {
    %c0_i32 = arith.constant 0 : i32
    %c0_i32_0 = arith.constant 0 : i32
    %c0_i32_1 = arith.constant 0 : i32
    return %c0_i32, %c0_i32_0 : i32, i32
  }
  func.func @transform_4(%arg0: i32, %arg1: i32) -> (i32, i32) {
    %c0_i32 = arith.constant 0 : i32
    %c0_i32_0 = arith.constant 0 : i32
    %c0_i32_1 = arith.constant 0 : i32
    return %c0_i32, %c0_i32_0 : i32, i32
  }
  func.func @transform_5(%arg0: i32, %arg1: i32) -> (i32, i32) {
    %c0_i32 = arith.constant 0 : i32
    %c0_i32_0 = arith.constant 0 : i32
    return %arg0, %c0_i32 : i32, i32
  }
}

</mosaic_0001>

<bundles_post_ra>
// kernel: tpu_custom_call.1
= control target key start
LH: loop header
LB: loop body
LE: loop exit
PB: predicated region body
PF: predicated region fallthrough
CT: control target
= control target key end

     0   :  { %10 = vsyncpa [#allocation3], 0  ;;  %s440_s0 = inlined_call_operand.hbm [shape: f32[8,128], index: 0, kind: input, shape index: {}]   ;;  %s441_s1 = inlined_call_operand.hbm [shape: f32[128,128], index: 1, kind: input, shape index: {}]   ;;  %s442_s2 = inlined_call_operand.vmem [shape: f32[1,128], index: 2, kind: input, shape index: {}]   ;;  %s443_s3 = inlined_call_operand.vmem [shape: f32[1,128], index: 3, kind: input, shape index: {}]   ;;  %s444_s4 = inlined_call_operand.vmem [shape: f32[1,128], index: 4, kind: input, shape index: {}]   ;;  %s445_s5 = inlined_call_operand.hbm [shape: f32[8,128], index: 5, kind: output, shape index: {}]  }
   0x1   :  { %11 = vsyncpa [#allocation6], 0 }
   0x2   :  { %12 = vsyncpa [#allocation4], 0  ;;  %s350_s18 = smov [#allocation2]   ;;  %s351_s20 = smov [#allocation5]  }
   0x3   :  { %s19_s19 = sshll.u32 %s350_s18, 4  ;;  %s28_s21 = sshll.u32 %s351_s20, 4  ;;  %s20_s19 = int_to_ptr.vmem [resolvable:$true] %s19_s19  ;;  %s388_s21 = int_to_ptr.vmem [resolvable:$true] %s28_s21 }
   0x4   :  { %s278_s24 = scalar_lea.hbm %s440_s0, 128 }
   0x5   :  { %p279_p0 = scmp.ne.s32.totalorder %s440_s0, %s278_s24  ;;  %p282_p1 = scmp.lt.u32.totalorder %s278_s24, %s440_s0 }
   0x7   :  { %p284_p2 = pnand %p282_p1, %p279_p0 }
   0x9   :  { %287 = shalt.err (!%p284_p2)
}
   0xa   :  { %s288_s29 = scalar_lea.vmem %s20_s19, 128  ;;  %p293_p4 = scmp.lt.s32.totalorder %s20_s19, %s20_s19 }
   0xb   :  { %p289_p3 = scmp.ne.s32.totalorder %s20_s19, %s288_s29  ;;  %p294_p5 = scmp.lt.s32.totalorder %s288_s29, %s288_s29 }
   0xd   :  { %p295_p6 = por %p294_p5, %p293_p4 }
   0xf   :  { %p296_p7 = pnand %p295_p6, %p289_p3 }
  0x11   :  { %299 = shalt.err (!%p296_p7)
}
  0x12   :  { %22 = dma.hbm_to_vmem [thread:$0]  %s440_s0, 128, %s20_s19, [#allocation3]  }
  0x13   :  { %s300_s9 = scalar_lea.hbm %s441_s1, 2048 }
  0x14   :  { %p301_p8 = scmp.ne.s32.totalorder %s441_s1, %s300_s9  ;;  %p304_p9 = scmp.lt.u32.totalorder %s300_s9, %s441_s1 }
  0x16   :  { %p306_p10 = pnand %p304_p9, %p301_p8 }
  0x18   :  { %309 = shalt.err (!%p306_p10)
}
  0x19   :  { %s310_s14 = scalar_lea.vmem %s388_s21, 2048  ;;  %p315_p12 = scmp.lt.s32.totalorder %s388_s21, %s388_s21 }
  0x1a   :  { %p311_p11 = scmp.ne.s32.totalorder %s388_s21, %s310_s14  ;;  %p316_p13 = scmp.lt.s32.totalorder %s310_s14, %s310_s14 }
  0x1c   :  { %p317_p0 = por %p316_p13, %p315_p12 }
  0x1e   :  { %p318_p1 = pnand %p317_p0, %p311_p11 }
  0x20   :  { %321 = shalt.err (!%p318_p1)
}
  0x21   :  { %s352_s0 = smov 128   ;;  %s353_s15 = smov 8  }
  0x22   :  { %34 = dma.hbm_to_vmem [thread:$0]  %s441_s1, 2048, %s388_s21, [#allocation6], %s352_s0, %s352_s0, %s353_s15  }
  0x23   :  { %344 = dma.done.wait [#allocation3], 128  }
  0x24   :  { %345 = vsyncadd [#allocation3], 4294967168 }
  0x25   :  { %346 = dma.done.wait [#allocation6], 2048  }
  0x26   :  { %347 = vsyncadd [#allocation6], 4294965248  ;;  %v354_v0 = vmov 0.0|0.0   ;;  %vm355_vm0 = vmmov 0   ;;  %v356_v1 = vmov 0.0   ;;  %v48_v2 = vld [vmem:[#allocation5] sm:$0xff] }
  0x27   :  { %244 = vmatprep.subr.bf16.mxu0 %v354_v0  ;;  %241 = vmatprep.mubr.msk.f32.mxu0 %vm355_vm0, %v356_v1  ;;  %v49_v3 = vld [vmem:[#allocation5 + $0x8] sm:$0xff]  ;;  %v50_v4 = vld [vmem:[#allocation5 + $0x10] sm:$0xff]  ;;  %v51_v6 = vld [vmem:[#allocation5 + $0x18] sm:$0xff]  ;;  %s357_s22 = smov [#allocation7]  }
  0x28   :  { %v245_v5 = vpack.c.bf16 %v49_v3, %v48_v2  ;;  %v248_v7 = vpack.c.bf16 %v51_v6, %v50_v4  ;;  %v52_v8 = vld [vmem:[#allocation5 + $0x20] sm:$0xff]  ;;  %v53_v9 = vld [vmem:[#allocation5 + $0x28] sm:$0xff]  ;;  %v54_v11 = vld [vmem:[#allocation5 + $0x30] sm:$0xff]  ;;  %s179_s23 = sshll.u32 %s357_s22, 4  ;;  %s180_s23 = int_to_ptr.vmem [resolvable:$true] %s179_s23 }
  0x29   :  { %v251_v10 = vpack.c.bf16 %v53_v9, %v52_v8  ;;  %v55_v12 = vld [vmem:[#allocation5 + $0x38] sm:$0xff]  ;;  %v56_v14 = vld [vmem:[#allocation5 + $0x40] sm:$0xff]  ;;  %v57_v15 = vld [vmem:[#allocation5 + $0x48] sm:$0xff]  ;;  %s322_s24 = scalar_lea.vmem %s180_s23, 128  ;;  %p327_p3 = scmp.lt.s32.totalorder %s180_s23, %s180_s23 }
  0x2a   :  { %246 = vmatpush3.bf16.msra.mxu0 %v245_v5  ;;  %v254_v13 = vpack.c.bf16 %v55_v12, %v54_v11  ;;  %v257_v16 = vpack.c.bf16 %v57_v15, %v56_v14  ;;  %v58_v17 = vld [vmem:[#allocation5 + $0x50] sm:$0xff]  ;;  %v59_v18 = vld [vmem:[#allocation5 + $0x58] sm:$0xff]  ;;  %v60_v20 = vld [vmem:[#allocation5 + $0x60] sm:$0xff]  ;;  %p323_p2 = scmp.ne.s32.totalorder %s180_s23, %s322_s24  ;;  %p328_p4 = scmp.lt.s32.totalorder %s322_s24, %s322_s24 }
  0x2b   :  { %247 = vmatprep.subr.bf16.mxu0 %v354_v0  ;;  %v260_v19 = vpack.c.bf16 %v59_v18, %v58_v17  ;;  %v61_v21 = vld [vmem:[#allocation5 + $0x68] sm:$0xff]  ;;  %v62_v23 = vld [vmem:[#allocation5 + $0x70] sm:$0xff]  ;;  %v63_v24 = vld [vmem:[#allocation5 + $0x78] sm:$0xff] }
  0x2c   :  { %v263_v22 = vpack.c.bf16 %v61_v21, %v60_v20  ;;  %v266_v25 = vpack.c.bf16 %v63_v24, %v62_v23  ;;  %v47_v26 = vld [vmem:[#allocation2] sm:$0xff]  ;;  %p329_p5 = por %p328_p4, %p327_p3 }
  0x2d   :  { %v189_v27 = vld [vmem:[%s442_s2] ss:$0 sm:$0xff] }
  0x2e   :  { %249 = vmatpush3.bf16.msra.mxu0 %v248_v7  ;;  %v190_v39 = vld [vmem:[%s443_s3] ss:$0 sm:$0xff]  ;;  %p330_p6 = pnand %p329_p5, %p323_p2 }
  0x2f   :  { %250 = vmatprep.subr.bf16.mxu0 %v354_v0  ;;  %v191_v41 = vld [vmem:[%s444_s4] ss:$0 sm:$0xff] }
  0x32   :  { %252 = vmatpush3.bf16.msra.mxu0 %v251_v10 }
  0x33   :  { %253 = vmatprep.subr.bf16.mxu0 %v354_v0 }
  0x36   :  { %255 = vmatpush3.bf16.msra.mxu0 %v254_v13 }
  0x37   :  { %256 = vmatprep.subr.bf16.mxu0 %v354_v0 }
  0x3a   :  { %258 = vmatpush3.bf16.msra.mxu0 %v257_v16 }
  0x3b   :  { %259 = vmatprep.subr.bf16.mxu0 %v354_v0 }
  0x3e   :  { %261 = vmatpush3.bf16.msra.mxu0 %v260_v19 }
  0x3f   :  { %262 = vmatprep.subr.bf16.mxu0 %v354_v0 }
  0x42   :  { %264 = vmatpush3.bf16.msra.mxu0 %v263_v22 }
  0x43   :  { %265 = vmatprep.subr.bf16.mxu0 %v354_v0 }
  0x46   :  { %267 = vmatpush3.bf16.msra.mxu0 %v266_v25 }
  0x49   :  { %242 = vmatmul.mubr.f32.vlgmr.msra.gmra.mrb[0].mxu0 %v47_v26 }
 0x11c   :  { %v130_v28 = vpop.f32.mrb[0].mxu0 }
 0x11d   :  { %v243_v29 = vpop.f32.mrb[1].mxu0  ;;  %v143_v30 = vadd.f32 %v189_v27, %v130_v28 }
 0x11f   :  { %144 = vadd.xlane.f32.xlu0 %v143_v30 }
 0x1ac   :  { %v145_v31 = vpop.xlane.xlu0 %144 }
 0x1ad   :  { %v146_v32 = vmul.f32 0.0078125, %v145_v31 }
 0x1af   :  { %v147_v33 = vsub.f32 %v143_v30, %v146_v32 }
 0x1b1   :  { %v148_v34 = vmul.f32 %v147_v33, %v147_v33 }
 0x1b3   :  { %149 = vadd.xlane.f32.xlu0 %v148_v34 }
 0x240   :  { %v150_v35 = vpop.xlane.xlu0 %149 }
 0x241   :  { %v151_v36 = vmul.f32 0.0078125, %v150_v35 }
 0x243   :  { %v152_v37 = vadd.f32 0.0001, %v151_v36 }
 0x245   :  { %276 = vrsqrt.f32 %v152_v37 }
 0x24f   :  { %v277_v38 = vpop.eup %276 }
 0x250   :  { %v154_v40 = vmul.f32 %v277_v38, %v147_v33 }
 0x252   :  { %v162_v42 = vmul.f32 %v190_v39, %v154_v40 }
 0x254   :  { %v170_v43 = vadd.f32 %v191_v41, %v162_v42 }
 0x256   :  { %v171_v44 = vmax.f32 %v170_v43, 0.0 }
 0x258   :  { %172 = vst [vmem:[#allocation7] sm:$0xff] %v171_v44 }
 0x259   :  { %333 = shalt.err (!%p330_p6)
}
 0x25a   :  { %s334_s26 = scalar_lea.hbm %s445_s5, 128 }
 0x25b   :  { %p335_p7 = scmp.ne.s32.totalorder %s445_s5, %s334_s26  ;;  %p338_p8 = scmp.lt.u32.totalorder %s334_s26, %s445_s5 }
 0x25d   :  { %p340_p9 = pnand %p338_p8, %p335_p7 }
 0x25f   :  { %343 = shalt.err (!%p340_p9)
}
 0x260   :  { %182 = dma.vmem_to_hbm [thread:$0]  %s180_s23, 128, %s445_s5, [#allocation4]  }
 0x261   :  { %348 = dma.done.wait [#allocation4], 128  }
 0x262   :  { %349 = vsyncadd [#allocation4], 4294967168 }
 0x263   :  { %186 = vsyncpa [#allocation3], 1 }
 0x264   :  { %187 = vsyncpa [#allocation6], 1 }
 0x265   :  { %188 = vsyncpa [#allocation4], 1 }

</bundles_post_ra>
